<compile_context>
chip_gen: v7x
topology: tpu7x:2x2x1
jax: 0.10.0
libtpu: 0.0.40
codegen_flags: <defaults>
</compile_context>

<pallas_src>
import jax
import jax.numpy as jnp
from jax.experimental import pallas as pl
from jax.experimental.pallas import tpu as pltpu


def _transition_kernel(x_ref, w_ref, b_ref, o_ref):
    # x_ref: (TB, C_in, HW)   w_ref: (C_out, C_in)   b_ref: (C_out, 1)
    w = w_ref[...].astype(jnp.float32)              # resident, loaded once
    b = b_ref[...].astype(jnp.float32)              # (C_out, 1), broadcasts over lanes
    tb = x_ref.shape[0]                             # static

    # Static unrolled loop over the batch tile: each iteration is one MXU
    # matmul (C_out, C_in) @ (C_in, HW) with HW lane-dense columns, bias add
    # and ReLU on the VPU, then a lane-dense (C_out, HW) store.
    for i in range(tb):
        xi = x_ref[i].astype(jnp.float32)           # (C_in, HW)
        yi = jnp.dot(w, xi, preferred_element_type=jnp.float32) + b
        o_ref[i] = jnp.maximum(yi, 0.0).astype(o_ref.dtype)


def _pick_tb(B, C_in, C_out, HW, itemsize):
    """Batch-tile size: big DMAs, even division of B, >=2 grid steps, VMEM-safe."""
    per_row = (C_in + C_out) * HW * itemsize
    target_bytes = 2 * 1024 * 1024                  # ~2 MiB of in+out per step
    tb = max(1, min(B, 32, target_bytes // max(per_row, 1)))
    if B >= 2:
        tb = min(tb, max(1, B // 2))                # keep >=2 steps (v7x 2 TCs)
    while B % tb:                                   # avoid ragged trailing block
        tb -= 1
    return tb


def transition(x, w, b, *, tb=None):
    """x: (B, C_in, H, W) f32; w: (C_out, C_in) (1x1 conv weight); b: (C_out,)."""
    B, C_in, H, W = x.shape
    C_out = w.shape[0]
    HW = H * W

    x_flat = x.reshape(B, C_in, HW)
    b_col = b.reshape(C_out, 1)

    if tb is None:
        tb = _pick_tb(B, C_in, C_out, HW, x.dtype.itemsize)
    grid = (B // tb,)

    out = pl.pallas_call(
        _transition_kernel,
        out_shape=jax.ShapeDtypeStruct((B, C_out, HW), x.dtype),
        grid=grid,
        in_specs=[
            pl.BlockSpec((tb, C_in, HW), lambda i: (i, 0, 0)),   # batch tile of x
            pl.BlockSpec((C_out, C_in), lambda i: (0, 0)),       # conv weight (resident)
            pl.BlockSpec((C_out, 1), lambda i: (0, 0)),          # conv bias   (resident)
        ],
        out_specs=pl.BlockSpec((tb, C_out, HW), lambda i: (i, 0, 0)),
        compiler_params=pltpu.CompilerParams(
            dimension_semantics=("parallel",),
            vmem_limit_bytes=32 * 1024 * 1024,
        ),
    )(x_flat, w, b_col)
    return out.reshape(B, C_out, H, W)


def _reference(x, w, b):
    """Pure-JAX reference mirroring the PyTorch forward: ReLU(Conv2d_1x1(x))."""
    y = jnp.einsum('oc,bchw->bohw', w, x) + b[None, :, None, None]
    return jnp.maximum(y, 0.0)


if __name__ == "__main__":
    # Small shapes consistent with the module: batch=2, in_channels=4,
    # out_channels=8, spatial 16x16.
    B, C_in, C_out, H, W = 2, 4, 8, 16, 16

    key = jax.random.PRNGKey(0)
    kx, kw, kb = jax.random.split(key, 3)

    x = jax.random.normal(kx, (B, C_in, H, W), dtype=jnp.float32)
    w = 0.1 * jax.random.normal(kw, (C_out, C_in), dtype=jnp.float32)  # conv.weight (C_out,C_in,1,1)
    b = 0.1 * jax.random.normal(kb, (C_out,), dtype=jnp.float32)       # conv.bias

    out = transition(x, w, b)
    out = jax.block_until_ready(out)

    ref = _reference(x, w, b)
    assert out.shape == (B, C_out, H, W)
    assert jnp.allclose(out, ref, atol=1e-5, rtol=1e-5), "mismatch vs reference"

    print("KERNEL_OK")
</pallas_src>

<mosaic_0001>
module attributes {stable_mosaic.version = 11 : i64} {
  func.func @_transition_kernel(%arg0: i32, %arg1: memref<1x4x256xf32, #tpu.memory_space<vmem>>, %arg2: memref<8x4xf32, #tpu.memory_space<vmem>>, %arg3: memref<8x1xf32, #tpu.memory_space<vmem>>, %arg4: memref<1x8x256xf32, #tpu.memory_space<vmem>>) attributes {dimension_semantics = [#tpu.dimension_semantics<parallel>], iteration_bounds = array<i64: 2>, scalar_prefetch = 0 : i64, scratch_operands = 0 : i64, tpu.core_type = #tpu.core_type<tc>, window_params = [{transform_indices = @transform_0, window_bounds = array<i64: 1, 4, 256>}, {pipeline_mode = #tpu.pipeline_mode<synchronous>, transform_indices = @transform_1, window_bounds = array<i64: 8, 4>}, {pipeline_mode = #tpu.pipeline_mode<synchronous>, transform_indices = @transform_2, window_bounds = array<i64: 8, 1>}, {transform_indices = @transform_3, window_bounds = array<i64: 1, 8, 256>}]} {
    %c0 = arith.constant 0 : index
    %c0_0 = arith.constant 0 : index
    %0 = vector.load %arg2[%c0, %c0_0] : memref<8x4xf32, #tpu.memory_space<vmem>>, vector<8x4xf32>
    %c0_1 = arith.constant 0 : index
    %c0_2 = arith.constant 0 : index
    %1 = vector.load %arg3[%c0_1, %c0_2] : memref<8x1xf32, #tpu.memory_space<vmem>>, vector<8x1xf32>
    %c0_3 = arith.constant 0 : index
    %c0_4 = arith.constant 0 : index
    %c0_5 = arith.constant 0 : index
    %2 = vector.load %arg1[%c0_3, %c0_4, %c0_5] : memref<1x4x256xf32, #tpu.memory_space<vmem>>, vector<1x4x256xf32>
    %3 = vector.shape_cast %2 : vector<1x4x256xf32> to vector<4x256xf32>
    %cst = arith.constant dense<0.000000e+00> : vector<8x256xf32>
    %4 = tpu.matmul %0, %3, %cst {dimension_numbers = #tpu.dot_dimension_numbers<[1], [0], [0], [1], [0, 0, 1, 1], [], []>} : vector<8x4xf32>, vector<4x256xf32>, vector<8x256xf32> -> vector<8x256xf32>
    %5 = vector.broadcast %1 : vector<8x1xf32> to vector<8x256xf32>
    %6 = arith.addf %4, %5 : vector<8x256xf32>
    %cst_6 = arith.constant 0.000000e+00 : f32
    %7 = vector.broadcast %cst_6 : f32 to vector<8x256xf32>
    %8 = arith.maximumf %6, %7 : vector<8x256xf32>
    %c0_7 = arith.constant 0 : index
    %c0_8 = arith.constant 0 : index
    %c0_9 = arith.constant 0 : index
    %9 = vector.load %arg4[%c0_7, %c0_8, %c0_9] : memref<1x8x256xf32, #tpu.memory_space<vmem>>, vector<1x8x256xf32>
    %10 = vector.shape_cast %9 : vector<1x8x256xf32> to vector<8x256xf32>
    %11 = vector.shape_cast %8 : vector<8x256xf32> to vector<1x8x256xf32>
    tpu.vector_store %arg4[%c0_7, %c0_8, %c0_9], %11 {strides = array<i32>} : memref<1x8x256xf32, #tpu.memory_space<vmem>>, vector<1x8x256xf32>,
    return
  }
  func.func @transform_0(%arg0: i32) -> (i32, i32, i32) {
    %c0_i32 = arith.constant 0 : i32
    %c0_i32_0 = arith.constant 0 : i32
    %c0_i32_1 = arith.constant 0 : i32
    return %arg0, %c0_i32, %c0_i32_0 : i32, i32, i32
  }
  func.func @transform_1(%arg0: i32) -> (i32, i32) {
    %c0_i32 = arith.constant 0 : i32
    %c0_i32_0 = arith.constant 0 : i32
    %c0_i32_1 = arith.constant 0 : i32
    return %c0_i32, %c0_i32_0 : i32, i32
  }
  func.func @transform_2(%arg0: i32) -> (i32, i32) {
    %c0_i32 = arith.constant 0 : i32
    %c0_i32_0 = arith.constant 0 : i32
    %c0_i32_1 = arith.constant 0 : i32
    return %c0_i32, %c0_i32_0 : i32, i32
  }
  func.func @transform_3(%arg0: i32) -> (i32, i32, i32) {
    %c0_i32 = arith.constant 0 : i32
    %c0_i32_0 = arith.constant 0 : i32
    %c0_i32_1 = arith.constant 0 : i32
    return %arg0, %c0_i32, %c0_i32_0 : i32, i32, i32
  }
}

</mosaic_0001>

<bundles_post_ra>
// kernel: tpu_custom_call.1
= control target key start
LH: loop header
LB: loop body
LE: loop exit
PB: predicated region body
PF: predicated region fallthrough
CT: control target
= control target key end

     0   :  { %8 = vsyncpa [#allocation3], 0  ;;  %s590_s0 = inlined_call_operand.vmem [shape: f32[2,4,256], index: 0, kind: input, shape index: {}]   ;;  %s591_s1 = inlined_call_operand.vmem [shape: f32[8,4], index: 1, kind: input, shape index: {}]   ;;  %s592_s2 = inlined_call_operand.vmem [shape: f32[8,1], index: 2, kind: input, shape index: {}]   ;;  %s593_s3 = inlined_call_operand.hbm [shape: f32[2,8,256], index: 3, kind: output, shape index: {}]  }
   0x1   :  { %10 = vsyncpa [#allocation3 + $0x1], 0  ;;  %s484_s12 = smov 0   ;;  %s486_s13 = smov 0  }
   0x2   :  { %s488_s14 = smov 0   ;;  %s490_s15 = smov 0  }
   0x3 LB: > { %s505_s16 = sadd.s32 4294967295, %s459_s15   ;;  %s337_s17 = sadd.s32 4294967294, %s459_s15   ;;  %s459_s15 = sphi %s490_s15, %s599_s15   ;;  %s455_s14 = sphi %s488_s14, %s598_s14   ;;  %s451_s13 = sphi %s486_s13, %s597_s13   ;;  %s447_s12 = sphi %s484_s12, %s596_s12  }
   0x4   : > { %s509_s18 = sadd.s32 1, %s459_s15   ;;  %s91_s19 = sadd.s32 1, %s455_s14 }
   0x5   : > { %s88_s20 = ssub.s32 %s459_s15, %s509_s18  ;;  %p101_p0 = scmp.ne.s32.totalorder %s455_s14, %s451_s13 }
   0x6   : > { %p89_p1 = scmp.eq.s32.totalorder %s88_s20, 0  ;;  %p102_p2 = scmp.eq.s32.totalorder %s505_s16, 1 }
   0x7   : > { %p107_p3 = scmp.ne.s32.totalorder %s451_s13, %s447_s12  ;;  %p108_p4 = scmp.eq.s32.totalorder %s337_s17, 1 }
   0x8   : > { %s520_s21 = scalar_select %p89_p1, %s455_s14, %s91_s19  }
   0x9   : > { %p522_p5 = por %p102_p2, %p101_p0  ;;  %p526_p6 = por %p108_p4, %p107_p3 }
   0xa   : > { %p340_p7 = scmp.ge.s32.totalorder %s459_s15, 1  ;;  %p140_p8 = scmp.lt.s32.totalorder %s459_s15, 3 }
   0xc   : > { %p141_p9 = pnand %p340_p7, %p140_p8 }
   0xd   : > { %p164_p10 = scmp.lt.s32.totalorder (!%p141_p9), %s505_s16, 1  ;;  %v461_v0 = vmov (!%p141_p9), 0.0   ;;  %v462_v1 = vmov (!%p141_p9), 0   ;;  %v170_v2 = vld [vmem:[%s592_s2] sm:$0xff] (!%p141_p9)  ;;  %vm183_vm0 = vcmask (!%p141_p9), 1043456   ;;  %vm179_vm1 = vcmask (!%p141_p9), 31744  }
   0xe   : > { %144 = sbr.rel (%p141_p9) target bundleno = 261 (0x105), region = 32  ;;  %252 = vmatprep.mubr.f32.mxu0 (!%p141_p9), %v461_v0  ;;  %395 = vset.pattern.permute.xlu0 (!%p141_p9), %v462_v1  ;;  %v169_v5 = vld [vmem:[%s591_s1] sm:$0xff] (!%p141_p9)  ;;  %s161_s6 = sand.u32 (!%p141_p9), 1, %s451_s13  }
   0xf   : > { %174 = vperm.xlu0 (!%p141_p9), %395, %v170_v2   ;;  %s341_s7 = sshll.u32 (!%p141_p9), %s161_s6, 4  ;;  %s353_s8 = sshll.u32 (!%p141_p9), %s505_s16, 8 }
  0x10   : > { %s163_s9 = scalar_lea.vmem (!%p141_p9), [#allocation2], %s341_s7  ;;  %s548_s19 = scalar_lea.hbm (!%p141_p9), %s593_s3, %s353_s8 }
  0x11   : > { %s278_s10 = sshll.u32 (!%p141_p9), %s163_s9, 4  ;;  %s264_s20 = scalar_lea.sflag (!%p141_p9), [#allocation3], %s161_s6  ;;  %s550_s10 = int_to_ptr.vmem [resolvable:$true] %s278_s10 }
  0x12   : > { %s397_s24 = scalar_lea.vmem (!%p141_p9), %s550_s10, 256 }
  0x13   : > { %p398_p11 = scmp.ne.s32.totalorder (!%p141_p9), %s550_s10, %s397_s24 }
  0x15   : > { %s165_s26 = scalar_select %p164_p10, %s505_s16, 1 }
  0x16   : > { %p399_p12 = pnand %p398_p11, %p522_p5  ;;  %s463_s16 = smov [#allocation2]  }
  0x17   : > { %s352_s27 = sshll.u32 %s165_s26, 3  ;;  %s401_s25 = sshll.u32 %s463_s16, 4  ;;  %s402_s25 = int_to_ptr.vmem [resolvable:$false] %s401_s25 }
  0x18   : > { %s168_s30 = scalar_lea.vmem %s590_s0, %s352_s27  ;;  %p400_p13 = pneg %p399_p12 }
  0x19   : > { %v171_v3 = vld [vmem:[%s168_s30] sm:$0xff]  ;;  %s403_s26 = scalar_lea.vmem %s402_s25, 512  ;;  %p404_p0 = scmp.lt.s32.totalorder %s550_s10, %s402_s25 }
  0x1a   : > { %v178_v4 = vcombine.high %v171_v3, %v171_v3  ;;  %p405_p1 = scmp.lt.s32.totalorder %s403_s26, %s397_s24 }
  0x1c   : > { %344 = vmatprep.subr.msk.mxu0 %vm183_vm0, %v178_v4  ;;  %p406_p2 = por %p405_p1, %p404_p0 }
  0x1d   : > { %345 = vmatpush1.msk.msra.mxu0 %vm183_vm0, %v171_v3 }
  0x1e   : > { %346 = vmatmul.mubr.msk.f32.vlgmr.msra.gmra.mrb[0].mxu0 %vm179_vm1, %v169_v5  ;;  %p407_p3 = pnand %p406_p2, %p400_p13 }
  0x8e   : > { %v175_v6 = vpop.permute.xlu0 %174 }
  0xf1   : > { %v254_v7 = vpop.f32.mrb[0].mxu0 }
  0xf2   : > { %v255_v8 = vadd.f32 %v254_v7, %v175_v6  ;;  %v256_v9 = vpop.f32.mrb[1].mxu0 }
  0xf3   : > { %v257_v10 = vadd.f32 %v256_v9, %v175_v6 }
  0xf4   : > { %v259_v11 = vmax.f32 %v255_v8, 0.0 }
  0xf5   : > { %v260_v12 = vmax.f32 %v257_v10, 0.0 }
  0xf6   : > { %261 = vst [vmem:[%s163_s9] sm:$0xff] %v259_v11 }
  0xf7   : > { %262 = vst [vmem:[%s163_s9 + $0x8] sm:$0xff] %v260_v12 }
  0xf8   : > { %410 = shalt.err (!%p407_p3)
}
  0xf9   : > { %s411_s27 = scalar_lea.hbm %s548_s19, 256  ;;  %s415_s30 = scalar_lea.hbm %s593_s3, 512 }
  0xfa   : > { %p412_p4 = scmp.ne.s32.totalorder %s548_s19, %s411_s27  ;;  %p416_p9 = scmp.lt.u32.totalorder %s548_s19, %s593_s3 }
  0xfb   : > { %p417_p10 = scmp.lt.u32.totalorder %s415_s30, %s411_s27  ;;  %p419_p12 = scmp.lt.u32.totalorder %s411_s27, %s548_s19 }
  0xfc   : > { %p413_p7 = pnand %p412_p4, %p522_p5 }
  0xfd   : > { %p418_p11 = por %p417_p10, %p416_p9 }
  0xfe   : > { %p414_p8 = pneg %p413_p7 }
  0xff   : > { %p420_p13 = por %p419_p12, %p418_p11 }
 0x101   : > { %p421_p0 = pnand %p420_p13, %p414_p8 }
 0x103   : > { %424 = shalt.err (!%p421_p0)
}
 0x104   : > { %354 = dma.vmem_to_hbm [thread:$0]  (%p522_p5), %s550_s10, 256, %s548_s19, %s264_s20  }
 0x105 PF: > { %p360_p1 = scmp.ge.s32.totalorder %s459_s15, 2  ;;  %s290_s6 = sand.u32 1, %s447_s12  }
 0x106   : > { %s291_s7 = scalar_lea.sflag [#allocation3], %s290_s6 }
 0x107   : > { %p357_p2 = pnand %p360_p1, %p526_p6 }
 0x109   : > { %442 = dma.done.wait (!%p357_p2), %s291_s7, 256  }
 0x10a   : > { %444 = vsyncadd (!%p357_p2), %s291_s7, 4294967040  ;;  %p13_p3 = scmp.ge.s32.totalorder %s509_s18, 4   ;;  %s596_s12 = smov %s451_s13 }
 0x10b   : > { %s597_s13 = smov %s455_s14  ;;  %s598_s14 = smov %s520_s21 }
 0x10c   : > { %s599_s15 = smov %s509_s18  ;;  %15 = sbr.rel (!%p13_p3) target bundleno = 3 (0x3), region = 67 }
 0x113   :  { %296 = vsyncpa [#allocation3], 1 }
 0x114   :  { %298 = vsyncpa [#allocation3 + $0x1], 1 }

</bundles_post_ra>
